<compile_context>
chip_gen: v5e
topology: v5e:2x2
jax: 0.10.0
libtpu: 0.0.40
codegen_flags: <defaults>
</compile_context>

<pallas_src>
import functools

import jax
import jax.numpy as jnp
from jax.experimental import pallas as pl
from jax.experimental.pallas import tpu as pltpu


def _round_up(x, m):
    return ((x + m - 1) // m) * m


# ----------------------------------------------------------------------------
# Pallas kernel: one tile of tokens -> projected embeddings.
# ----------------------------------------------------------------------------
def adaptive_embed_kernel(g_ref, w_ref, o_ref):
    """g_ref: [TN, K] bf16 gathered combined-table rows (emb slice + cluster one-hot)
       w_ref: [K, P]  bf16 combined projection weight (biases + sqrt(P) scale folded in)
       o_ref: [TN, P] out_dtype projected embeddings
    """
    acc = jnp.dot(g_ref[...], w_ref[...], preferred_element_type=jnp.float32)
    o_ref[...] = acc.astype(o_ref.dtype)


# ----------------------------------------------------------------------------
# Parameter construction (mirrors the PyTorch module's parameters).
# ----------------------------------------------------------------------------
def init_params(key, vocab_size, base_embedding_dim, projection_dim, cutoffs,
                div_val=1):
    n_emb = len(cutoffs) + 1
    cut = [0] + list(cutoffs) + [vocab_size]
    dims = [base_embedding_dim // (div_val ** i) for i in range(n_emb)]
    keys = jax.random.split(key, 3 * n_emb)
    emb_tables, proj_ws, proj_bs = [], [], []
    for i in range(n_emb):
        n_rows = cut[i + 1] - cut[i]
        if i == n_emb - 1:
            n_rows += 1                       # extra row, padding_idx = cluster size
        t = jax.random.normal(keys[3 * i], (n_rows, dims[i]), jnp.float32)
        if i == n_emb - 1:
            t = t.at[-1].set(0.0)             # padding row is zero
        bound = 1.0 / (dims[i] ** 0.5)
        w = jax.random.uniform(keys[3 * i + 1], (projection_dim, dims[i]),
                               jnp.float32, -bound, bound)
        b = jax.random.uniform(keys[3 * i + 2], (projection_dim,),
                               jnp.float32, -bound, bound)
        emb_tables.append(t)
        proj_ws.append(w)
        proj_bs.append(b)
    return dict(emb=emb_tables, w=proj_ws, b=proj_bs,
                cutoffs=cut, dims=dims, proj_dim=projection_dim)


def build_combined(params):
    """One-time prep (call OUTSIDE the per-step forward and cache the result).

    Returns bf16 (table [V+1, K_pad], w_comb [K_pad, P]) with biases, the
    sqrt(P) scale and the K->128-multiple zero padding all folded in."""
    dims = params['dims']
    proj_dim = params['proj_dim']
    scale = float(proj_dim) ** 0.5
    n_clusters = len(dims)
    e_tot = sum(dims)
    k_raw = e_tot + n_clusters
    k_pad = _round_up(k_raw, 128)
    offsets = [sum(dims[:i]) for i in range(n_clusters)]

    rows = []
    for i in range(n_clusters):
        t = params['emb'][i]                                   # [n_i, E_i]
        n_i = t.shape[0]
        left = jnp.zeros((n_i, offsets[i]), jnp.float32)
        right = jnp.zeros((n_i, e_tot - offsets[i] - dims[i]), jnp.float32)
        indicator = jnp.zeros((n_i, n_clusters), jnp.float32).at[:, i].set(1.0)
        rows.append(jnp.concatenate([left, t, right, indicator], axis=1))
    table = jnp.concatenate(rows, axis=0)                      # [V+1, k_raw]

    w_blocks = [jnp.transpose(params['w'][i]) for i in range(n_clusters)]
    b_block = jnp.stack(params['b'], axis=0)                   # [C, P]
    w_comb = jnp.concatenate(w_blocks + [b_block], axis=0) * scale   # scale folded

    table = jnp.pad(table, ((0, 0), (0, k_pad - k_raw)))       # exact zero padding
    w_comb = jnp.pad(w_comb, ((0, k_pad - k_raw), (0, 0)))
    return table.astype(jnp.bfloat16), w_comb.astype(jnp.bfloat16)


# ----------------------------------------------------------------------------
# Token-tile selection: multiple of 16 (bf16 sublanes), minimal padding waste,
# prefer >= 2 tiles so the parallel axis can shard across v7x's two TCs.
# ----------------------------------------------------------------------------
def _pick_tile(n_tok, tile_n):
    tile_n = max(16, (tile_n // 16) * 16)
    n_min = _round_up(n_tok, 16)
    if n_min <= tile_n:
        if n_min % 32 == 0:
            return n_min // 2, n_min          # two even tiles, zero extra padding
        return n_min, n_min
    best_key, best = None, None
    tn = tile_n
    while tn >= 16:
        n_pad = _round_up(n_tok, tn)
        grid = n_pad // tn
        key = (n_pad - n_tok, 0 if grid >= 2 else 1, -tn)
        if best_key is None or key < best_key:
            best_key, best = key, (tn, n_pad)
        tn -= 16
    return best


# ----------------------------------------------------------------------------
# Forward pass (== Adaptive_Embedding.forward).
# table_bf16 / w_bf16 come from build_combined (built once, cached).
# ----------------------------------------------------------------------------
def adaptive_embedding_forward(table_bf16, w_bf16, x, *, pad_id, tile_n=512,
                               out_dtype=jnp.bfloat16):
    k_dim = table_bf16.shape[1]
    proj_dim = w_bf16.shape[1]

    flat = x.reshape(-1).astype(jnp.int32)
    n_tok = flat.shape[0]
    tn, n_pad = _pick_tile(n_tok, tile_n)
    flat_pad = jnp.pad(flat, (0, n_pad - n_tok), constant_values=pad_id)

    # Data-dependent per-token row gather; allow_input_fusion lets XLA fuse it
    # into the kernel's input pipeline (no HBM materialization + re-read).
    gathered = table_bf16[flat_pad]                            # [n_pad, K]

    grid = (n_pad // tn,)
    out_pad = pl.pallas_call(
        adaptive_embed_kernel,
        out_shape=jax.ShapeDtypeStruct((n_pad, proj_dim), out_dtype),
        grid_spec=pltpu.PrefetchScalarGridSpec(
            num_scalar_prefetch=0,
            grid=grid,
            in_specs=[
                pl.BlockSpec((tn, k_dim), lambda i: (i, 0)),       # token tile
                pl.BlockSpec((k_dim, proj_dim), lambda i: (0, 0)), # weight resident
            ],
            out_specs=pl.BlockSpec((tn, proj_dim), lambda i: (i, 0)),
        ),
        compiler_params=pltpu.CompilerParams(
            dimension_semantics=("parallel",),
            vmem_limit_bytes=48 * 1024 * 1024,
            allow_input_fusion=[True, False],
        ),
    )(gathered, w_bf16)

    return out_pad[:n_tok].reshape(*x.shape, proj_dim)


# ----------------------------------------------------------------------------
# Pure-JAX f32 reference mirroring the PyTorch forward (for validation).
# ----------------------------------------------------------------------------
def adaptive_embedding_reference(params, x):
    cut = params['cutoffs']
    dims = params['dims']
    proj_dim = params['proj_dim']
    n_clusters = len(dims)
    scale = float(proj_dim) ** 0.5
    flat = x.reshape(-1)
    out = jnp.zeros((flat.shape[0], proj_dim), jnp.float32)
    for i in range(n_clusters):
        l, r = cut[i], cut[i + 1]
        if i == n_clusters - 1:
            r += 1
        mask = (flat >= l) & (flat < r)
        t = params['emb'][i]
        local = jnp.clip(flat - l, 0, t.shape[0] - 1)
        emb = t[local]
        proj = emb @ params['w'][i].T + params['b'][i]
        out = jnp.where(mask[:, None], proj, out)
    return (out * scale).reshape(*x.shape, proj_dim)


if __name__ == "__main__":
    key = jax.random.PRNGKey(0)
    vocab_size = 24
    cutoffs = [8, 16]
    base_embedding_dim = 32
    projection_dim = 128            # lane-dense output (multiple of 128)
    div_val = 2                     # embedding_dims = [32, 16, 8] -> K=59 -> padded 128
    b, s = 4, 16                    # N = 64 tokens -> two 32-token tiles (grid=2)

    kp, kx = jax.random.split(key)
    params = init_params(kp, vocab_size, base_embedding_dim, projection_dim,
                         cutoffs, div_val)

    # One-time prep, hoisted out of the per-call forward (cache these).
    table_bf16, w_bf16 = build_combined(params)

    # token ids in [0, vocab_size] inclusive: id == vocab_size hits the last
    # cluster's extra padding row (zero embedding + bias), as in PyTorch.
    x = jax.random.randint(kx, (b, s), 0, vocab_size + 1, jnp.int32)

    fwd = jax.jit(functools.partial(adaptive_embedding_forward,
                                    pad_id=vocab_size, tile_n=512,
                                    out_dtype=jnp.bfloat16))
    out = fwd(table_bf16, w_bf16, x)
    jax.block_until_ready(out)

    ref = adaptive_embedding_reference(params, x)
    assert out.shape == (b, s, projection_dim)
    assert out.dtype == jnp.bfloat16

    # Relative check: bf16 operands + bf16 output vs f32 reference.
    abs_err = float(jnp.max(jnp.abs(out.astype(jnp.float32) - ref)))
    rel_err = abs_err / (float(jnp.max(jnp.abs(ref))) + 1e-6)
    assert rel_err < 0.03, f"rel err {rel_err} (abs {abs_err})"
    print("KERNEL_OK")
</pallas_src>

<mosaic_0001>
module attributes {stable_mosaic.version = 11 : i64} {
  func.func @adaptive_embed_kernel(%arg0: i32, %arg1: memref<32x128xbf16, #tpu.memory_space<vmem>>, %arg2: memref<128x128xbf16, #tpu.memory_space<vmem>>, %arg3: memref<32x128xbf16, #tpu.memory_space<vmem>>) attributes {dimension_semantics = [#tpu.dimension_semantics<parallel>], iteration_bounds = array<i64: 2>, scalar_prefetch = 0 : i64, scratch_operands = 0 : i64, tpu.core_type = #tpu.core_type<tc>, window_params = [{transform_indices = @transform_0, window_bounds = array<i64: 32, 128>}, {pipeline_mode = #tpu.pipeline_mode<synchronous>, transform_indices = @transform_1, window_bounds = array<i64: 128, 128>}, {transform_indices = @transform_2, window_bounds = array<i64: 32, 128>}]} {
    %c0 = arith.constant 0 : index
    %c0_0 = arith.constant 0 : index
    %0 = vector.load %arg1[%c0, %c0_0] : memref<32x128xbf16, #tpu.memory_space<vmem>>, vector<32x128xbf16>
    %c0_1 = arith.constant 0 : index
    %c0_2 = arith.constant 0 : index
    %1 = vector.load %arg2[%c0_1, %c0_2] : memref<128x128xbf16, #tpu.memory_space<vmem>>, vector<128x128xbf16>
    %cst = arith.constant dense<0.000000e+00> : vector<32x128xf32>
    %2 = tpu.matmul %0, %1, %cst {dimension_numbers = #tpu.dot_dimension_numbers<[1], [0], [0], [1], [0, 0, 1, 1], [], []>} : vector<32x128xbf16>, vector<128x128xbf16>, vector<32x128xf32> -> vector<32x128xf32>
    %3 = arith.truncf %2 : vector<32x128xf32> to vector<32x128xbf16>
    %c0_3 = arith.constant 0 : index
    %c0_4 = arith.constant 0 : index
    %4 = vector.load %arg3[%c0_3, %c0_4] : memref<32x128xbf16, #tpu.memory_space<vmem>>, vector<32x128xbf16>
    tpu.vector_store %arg3[%c0_3, %c0_4], %3 {strides = array<i32>} : memref<32x128xbf16, #tpu.memory_space<vmem>>, vector<32x128xbf16>,
    return
  }
  func.func @transform_0(%arg0: i32) -> (i32, i32) {
    %c0_i32 = arith.constant 0 : i32
    %c0_i32_0 = arith.constant 0 : i32
    return %arg0, %c0_i32 : i32, i32
  }
  func.func @transform_1(%arg0: i32) -> (i32, i32) {
    %c0_i32 = arith.constant 0 : i32
    %c0_i32_0 = arith.constant 0 : i32
    %c0_i32_1 = arith.constant 0 : i32
    return %c0_i32, %c0_i32_0 : i32, i32
  }
  func.func @transform_2(%arg0: i32) -> (i32, i32) {
    %c0_i32 = arith.constant 0 : i32
    %c0_i32_0 = arith.constant 0 : i32
    return %arg0, %c0_i32 : i32, i32
  }
}

</mosaic_0001>

<bundles_post_ra>
// kernel: adaptive_embedding_forward.1
= control target key start
LH: loop header
LB: loop body
LE: loop exit
PB: predicated region body
PF: predicated region fallthrough
CT: control target
= control target key end

     0   :  { %7 = vsyncpa [#allocation3], 0  ;;  %s642_s0 = inlined_call_operand.vmem [shape: bf16[64,128], index: 0, kind: input, shape index: {}]   ;;  %s643_s1 = inlined_call_operand.vmem [shape: bf16[128,128], index: 1, kind: input, shape index: {}]   ;;  %s644_s2 = inlined_call_operand.hbm [shape: bf16[64,128], index: 2, kind: output, shape index: {}]  }
   0x1   :  { %9 = vsyncpa [#allocation3 + $0x1], 0  ;;  %s534_s9 = smov 0   ;;  %s536_s10 = smov 0  }
   0x2   :  { %s538_s11 = smov 0   ;;  %s540_s12 = smov 0  }
   0x3 LB: > { %s555_s13 = sadd.s32 4294967295, %s515_s12   ;;  %s330_s14 = sadd.s32 4294967294, %s515_s12   ;;  %s515_s12 = sphi %s540_s12, %s650_s12   ;;  %s511_s11 = sphi %s538_s11, %s649_s11   ;;  %s507_s10 = sphi %s536_s10, %s648_s10   ;;  %s503_s9 = sphi %s534_s9, %s647_s9  }
   0x4   : > { %s559_s15 = sadd.s32 1, %s515_s12   ;;  %s69_s16 = sadd.s32 1, %s511_s11 }
   0x5   : > { %s66_s17 = ssub.s32 %s515_s12, %s559_s15  ;;  %p79_p0 = scmp.ne.s32.totalorder %s511_s11, %s507_s10 }
   0x6   : > { %p67_p1 = scmp.eq.s32.totalorder %s66_s17, 0  ;;  %p80_p2 = scmp.eq.s32.totalorder %s555_s13, 1 }
   0x7   : > { %p85_p3 = scmp.ne.s32.totalorder %s507_s10, %s503_s9  ;;  %p86_p4 = scmp.eq.s32.totalorder %s330_s14, 1 }
   0x8   : > { %s570_s18 = scalar_select %p67_p1, %s511_s11, %s69_s16  }
   0x9   : > { %p572_p5 = por %p80_p2, %p79_p0  ;;  %p576_p6 = por %p86_p4, %p85_p3 }
   0xa   : > { %p333_p7 = scmp.ge.s32.totalorder %s515_s12, 1  ;;  %p116_p8 = scmp.lt.s32.totalorder %s515_s12, 3 }
   0xc   : > { %p117_p9 = pnand %p333_p7, %p116_p8 }
   0xd   : > { %s335_s29 = sshll.u32 (!%p117_p9), %s555_s13, 2  ;;  %s135_s23 = sand.u32 (!%p117_p9), 1, %s507_s10  }
   0xe   : > { %120 = sbr.rel (%p117_p9) target bundleno = 192 (0xc0), region = 28  ;;  %p139_p10 = scmp.lt.s32.totalorder (!%p117_p9), %s335_s29, 7 }
   0xf   : > { %s334_s24 = sshll.u32 (!%p117_p9), %s135_s23, 4  ;;  %s392_s25 = sshll.u32 (!%p117_p9), %s555_s13, 4 }
  0x10   : > { %s264_s28 = scalar_lea.hbm (!%p117_p9), %s644_s2, %s392_s25  ;;  %s253_s4 = scalar_lea.sflag (!%p117_p9), [#allocation3], %s135_s23 }
  0x11   : > { %s267_s3 = sshll.u32 (!%p117_p9), %s264_s28, 4  ;;  %s268_s3 = int_to_ptr.hbm [resolvable:$true] %s267_s3 }
  0x12   : > { %s467_s5 = sshra.s32 (!%p117_p9), %s268_s3, 4  ;;  %s468_s5 = int_to_ptr.hbm [resolvable:$true] %s467_s5 }
  0x13   : > { %v391_v0 = vld [vmem:[%s643_s1 + $0x38] sm:$0xff]  ;;  %v390_v1 = vld [vmem:[%s643_s1 + $0x30] sm:$0xff]  ;;  %v389_v2 = vld [vmem:[%s643_s1 + $0x28] sm:$0xff]  ;;  %s652_s29 = smov (!%p139_p10, %s335_s29), 7  ;;  %s469_s13 = scalar_lea.hbm %s468_s5, 16 }
  0x14   : > { %225 = vmatpush.bf16.msra.mxu0 %v391_v0  ;;  %404 = vmatpush.bf16.msra.mxu1 %v391_v0  ;;  %v388_v3 = vld [vmem:[%s643_s1 + $0x20] sm:$0xff]  ;;  %v387_v4 = vld [vmem:[%s643_s1 + $0x18] sm:$0xff]  ;;  %v386_v5 = vld [vmem:[%s643_s1 + $0x10] sm:$0xff]  ;;  %s336_s8 = sshll.u32 %s652_s29, 2  ;;  %s137_s29 = scalar_lea.vmem [#allocation2], %s334_s24 }
  0x15   : > { %v385_v6 = vld [vmem:[%s643_s1 + $0x8] sm:$0xff]  ;;  %v384_v7 = vld [vmem:[%s643_s1] sm:$0xff]  ;;  %s142_s22 = scalar_lea.vmem %s642_s0, %s336_s8  ;;  %s265_s30 = sshll.u32 %s137_s29, 4  ;;  %s266_s30 = int_to_ptr.vmem [resolvable:$true] %s265_s30 }
  0x16   : > { %v382_v8 = vld [vmem:[%s142_s22] sm:$0xff]  ;;  %v383_v9 = vld [vmem:[%s142_s22 + $0x8] sm:$0xff]  ;;  %p470_p11 = scmp.ne.s32.totalorder %s468_s5, %s469_s13  ;;  %s473_s8 = scalar_lea.hbm %s644_s2, 32 }
  0x17   : > { %p474_p0 = scmp.lt.s32.totalorder %s468_s5, %s644_s2  ;;  %p475_p1 = scmp.lt.s32.totalorder %s473_s8, %s469_s13 }
  0x18   : > { %226 = vmatpush.bf16.msra.mxu0 %v390_v1  ;;  %405 = vmatpush.bf16.msra.mxu1 %v390_v1  ;;  %p471_p12 = pnand %p470_p11, %p572_p5 }
  0x19   : > { %p476_p2 = por %p475_p1, %p474_p0 }
  0x1a   : > { %p472_p13 = pneg %p471_p12 }
  0x1c   : > { %227 = vmatpush.bf16.msra.mxu0 %v389_v2  ;;  %406 = vmatpush.bf16.msra.mxu1 %v389_v2  ;;  %p477_p3 = pnand %p476_p2, %p472_p13 }
  0x20   : > { %228 = vmatpush.bf16.msra.mxu0 %v388_v3  ;;  %407 = vmatpush.bf16.msra.mxu1 %v388_v3 }
  0x24   : > { %229 = vmatpush.bf16.msra.mxu0 %v387_v4  ;;  %408 = vmatpush.bf16.msra.mxu1 %v387_v4 }
  0x28   : > { %230 = vmatpush.bf16.msra.mxu0 %v386_v5  ;;  %409 = vmatpush.bf16.msra.mxu1 %v386_v5 }
  0x2c   : > { %231 = vmatpush.bf16.msra.mxu0 %v385_v6  ;;  %410 = vmatpush.bf16.msra.mxu1 %v385_v6 }
  0x30   : > { %232 = vmatpush.bf16.msra.mxu0 %v384_v7  ;;  %411 = vmatpush.bf16.msra.mxu1 %v384_v7 }
  0x33   : > { %233 = vmatmul.bf16.vlgmr.msra.gmra.mxu0 %v382_v8  ;;  %238 = vmatmul.bf16.vlgmr.msra.gmra.mxu1 %v383_v9 }
  0xb0   : > { %v234_v10 = vpop.f32.mrf.mxu0  ;;  %v239_v11 = vpop.f32.mrf.mxu1 }
  0xb8   : > { %v236_v12 = vpop.f32.mrf.mxu0  ;;  %v241_v13 = vpop.f32.mrf.mxu1 }
  0xb9   : > { %v396_v14 = vpack.c.bf16 %v236_v12, %v234_v10  ;;  %v401_v15 = vpack.c.bf16 %v241_v13, %v239_v11 }
  0xbb   : > { %397 = vst [vmem:[%s137_s29] sm:$0xff] %v396_v14  }
  0xbc   : > { %403 = vst [vmem:[%s137_s29 + $0x8] sm:$0xff] %v401_v15  }
  0xbd   : > { %480 = shalt.err (!%p477_p3)
}
  0xbe   : > { %s517_s17 = smov 64   ;;  %s518_s21 = smov 4  }
  0xbf   : > { %412 = dma.vmem_to_hbm [thread:$0]  (%p572_p5), %s266_s30, 256, %s268_s3, %s253_s4, %s517_s17, %s517_s17, %s518_s21  }
  0xc0 PF: > { %p418_p4 = scmp.ge.s32.totalorder %s515_s12, 2  ;;  %s282_s22 = sand.u32 1, %s503_s9  }
  0xc1   : > { %s283_s23 = scalar_lea.sflag [#allocation3], %s282_s22 }
  0xc2   : > { %p415_p7 = pnand %p418_p4, %p576_p6 }
  0xc4   : > { %p416_p8 = pneg %p415_p7 }
  0xc6   : > { %498 = dma.done.wait (%p416_p8), %s283_s23, 256  }
  0xc7   : > { %500 = vsyncadd (%p416_p8), %s283_s23, 4294967040  ;;  %p12_p9 = scmp.ge.s32.totalorder %s559_s15, 4   ;;  %s647_s9 = smov %s507_s10 }
  0xc8   : > { %s648_s10 = smov %s511_s11  ;;  %s649_s11 = smov %s570_s18 }
  0xc9   : > { %s650_s12 = smov %s559_s15  ;;  %14 = sbr.rel (!%p12_p9) target bundleno = 3 (0x3), region = 63 }
  0xce   :  { %289 = vsyncpa [#allocation3], 1 }
  0xcf   :  { %291 = vsyncpa [#allocation3 + $0x1], 1 }

</bundles_post_ra>
